<compile_context>
chip_gen: v5e
topology: v5e:2x2
jax: 0.10.0
libtpu: 0.0.40
codegen_flags: <defaults>
</compile_context>

<pallas_src>
import functools
import math

import jax
import jax.numpy as jnp
from jax.experimental import pallas as pl
from jax.experimental.pallas import tpu as pltpu

DEFAULT_ALPHA = 0.1

LANE_CANDIDATES = (4096, 2048, 1024, 512, 256, 128)
MIN_GRID_STEPS = 8                      # pipeline fill/drain amortization + megacore
_SUBLANE_MULT = {4: 8, 2: 16, 1: 32}    # sublane rounding per itemsize


def _round_up(v, m):
    return ((v + m - 1) // m) * m


def _round_down(v, m):
    return (v // m) * m


def _target_tile_bytes():
    """Per-generation tile size: bigger tiles only where HBM is fast enough."""
    try:
        kind = jax.devices()[0].device_kind.lower()
    except Exception:  # pragma: no cover - defensive
        kind = ""
    if "7" in kind:          # v7x: ~3.2 TB/s, 32 MiB default scoped VMEM
        return 4 * 1024 * 1024
    return 2 * 1024 * 1024   # v5e / v6e (v5e's 16 MiB scoped default stays safe)


def _leaky_relu_kernel(x_ref, y_ref, mask_ref, *, alpha):
    x = x_ref[...]
    m = jnp.where(x > 0, jnp.asarray(1, x.dtype), jnp.asarray(alpha, x.dtype))
    mask_ref[...] = m
    y_ref[...] = x * m


def _choose_tiling(n, dtype, tile_bytes):
    """Pick a lane-dense (W, rows, row_tile) factorization for n elements."""
    itemsize = jnp.dtype(dtype).itemsize
    sub = _SUBLANE_MULT.get(itemsize, 8)
    tile_elems = max(tile_bytes // itemsize, 128 * sub)
    for w in LANE_CANDIDATES:
        if n % w == 0:
            rows = n // w
            # Cap by tile bytes ...
            rt_cap = max(_round_down(tile_elems // w, sub), sub)
            # ... and by a minimum number of grid steps (pipeline / megacore).
            rt_steps = _round_up(-(-rows // MIN_GRID_STEPS), sub)
            rt = min(rt_cap, rt_steps)
            if rt >= rows:
                rt = rows  # full-extent block along rows: always legal
            return w, rows, rt
    return None


def _run_2d(x2d, rt, alpha):
    rows, w = x2d.shape
    spec = pl.BlockSpec((rt, w), lambda i: (i, 0))
    return pl.pallas_call(
        functools.partial(_leaky_relu_kernel, alpha=alpha),
        out_shape=(
            jax.ShapeDtypeStruct((rows, w), x2d.dtype),
            jax.ShapeDtypeStruct((rows, w), x2d.dtype),
        ),
        grid_spec=pltpu.PrefetchScalarGridSpec(
            num_scalar_prefetch=0,
            grid=(pl.cdiv(rows, rt),),
            in_specs=[spec],
            out_specs=(spec, spec),
        ),
        compiler_params=pltpu.CompilerParams(
            dimension_semantics=("parallel",),  # shards steps across v7x's 2 TCs
        ),
    )(x2d)


def _jnp_leaky(x, alpha):
    m = jnp.where(x > 0, jnp.asarray(1, x.dtype), jnp.asarray(alpha, x.dtype))
    return x * m, m


def leaky_relu_pallas(x, alpha=DEFAULT_ALPHA):
    """Returns (x * mask, mask), matching the PyTorch LeakyReLU.forward."""
    assert alpha >= 0, "Alpha should be positive"
    orig_shape = x.shape
    dtype = x.dtype
    n = math.prod(orig_shape) if orig_shape else 1
    tile_bytes = _target_tile_bytes()

    tiling = _choose_tiling(n, dtype, tile_bytes)
    if tiling is not None:
        # Fast path: no padding, no output slicing; reshapes are contiguous
        # row-major bit-reinterpretations (no extra HBM pass).
        w, rows, rt = tiling
        x2d = x.reshape(rows, w)
        y2d, m2d = _run_2d(x2d, rt, alpha)
        return y2d.reshape(orig_shape), m2d.reshape(orig_shape)

    # Lane-ragged element count: run the 128-aligned prefix through the kernel
    # and compute the (<128-element) tail in plain jnp.
    flat = x.reshape(-1)
    n_main = (n // 128) * 128
    if n_main == 0:
        # Smaller than one lane row: a kernel launch buys nothing.
        y, m = _jnp_leaky(flat, alpha)
        return y.reshape(orig_shape), m.reshape(orig_shape)

    w, rows, rt = _choose_tiling(n_main, dtype, tile_bytes)
    y_main, m_main = _run_2d(flat[:n_main].reshape(rows, w), rt, alpha)
    y_tail, m_tail = _jnp_leaky(flat[n_main:], alpha)
    y = jnp.concatenate([y_main.reshape(-1), y_tail]).reshape(orig_shape)
    m = jnp.concatenate([m_main.reshape(-1), m_tail]).reshape(orig_shape)
    return y, m


def _reference(x, alpha=DEFAULT_ALPHA):
    mask = (x > 0).astype(x.dtype)
    mask = mask + (1 - mask) * alpha
    return x * mask, mask


def _check(name, x, alpha=DEFAULT_ALPHA, tol=1e-6):
    y, m = leaky_relu_pallas(x, alpha)
    jax.block_until_ready(y)
    jax.block_until_ready(m)
    ref_y, ref_m = _reference(x, alpha)
    assert y.shape == x.shape and m.shape == x.shape, f"{name} shape mismatch"
    assert jnp.allclose(y, ref_y, atol=tol, rtol=tol), f"{name} y mismatch"
    assert jnp.allclose(m, ref_m, atol=tol, rtol=tol), f"{name} mask mismatch"


if __name__ == "__main__":
    key = jax.random.PRNGKey(0)
    keys = jax.random.split(key, 5)

    # Small NCHW input matching the module's typical use (single grid step).
    _check("small", jax.random.normal(keys[0], (2, 4, 16, 16), dtype=jnp.float32))

    # Larger activation: exercises >= 8 grid steps with ~512 KiB lane-dense tiles.
    _check("large", jax.random.normal(keys[1], (16, 16, 64, 64), dtype=jnp.float32))

    # bf16 input: exercises dtype-aware (bytes-based, 16-sublane) tiling.
    _check("bf16", jax.random.normal(keys[2], (8, 256, 256), dtype=jnp.bfloat16),
           tol=1e-2)

    # Lane-ragged size > 128: 128-aligned prefix via kernel + tiny jnp tail.
    _check("ragged", jax.random.normal(keys[3], (3, 5, 67), dtype=jnp.float32))

    # Tiny (< one lane row): pure jnp path.
    _check("tiny", jax.random.normal(keys[4], (3, 5, 7), dtype=jnp.float32))

    print("KERNEL_OK")
</pallas_src>

<mosaic_0001>
module attributes {stable_mosaic.version = 11 : i64} {
  func.func @_leaky_relu_kernel(%arg0: i32, %arg1: memref<1x2048xf32, #tpu.memory_space<vmem>>, %arg2: memref<1x2048xf32, #tpu.memory_space<vmem>>, %arg3: memref<1x2048xf32, #tpu.memory_space<vmem>>) attributes {dimension_semantics = [#tpu.dimension_semantics<parallel>], iteration_bounds = array<i64: 1>, scalar_prefetch = 0 : i64, scratch_operands = 0 : i64, tpu.core_type = #tpu.core_type<tc>, window_params = [{transform_indices = @transform_0, window_bounds = array<i64: 1, 2048>}, {transform_indices = @transform_1, window_bounds = array<i64: 1, 2048>}, {transform_indices = @transform_2, window_bounds = array<i64: 1, 2048>}]} {
    %c0 = arith.constant 0 : index
    %c0_0 = arith.constant 0 : index
    %0 = vector.load %arg1[%c0, %c0_0] : memref<1x2048xf32, #tpu.memory_space<vmem>>, vector<1x2048xf32>
    %cst = arith.constant 0.000000e+00 : f32
    %1 = vector.broadcast %cst : f32 to vector<1x2048xf32>
    %2 = arith.cmpf ogt, %0, %1 : vector<1x2048xf32>
    %cst_1 = arith.constant 1.000000e+00 : f32
    %cst_2 = arith.constant 1.000000e-01 : f32
    %3 = vector.broadcast %cst_1 : f32 to vector<1x2048xf32>
    %4 = vector.broadcast %cst_2 : f32 to vector<1x2048xf32>
    %5 = arith.select %2, %3, %4 : vector<1x2048xi1>, vector<1x2048xf32>
    %c0_3 = arith.constant 0 : index
    %c0_4 = arith.constant 0 : index
    %6 = vector.load %arg3[%c0_3, %c0_4] : memref<1x2048xf32, #tpu.memory_space<vmem>>, vector<1x2048xf32>
    tpu.vector_store %arg3[%c0_3, %c0_4], %5 {strides = array<i32>} : memref<1x2048xf32, #tpu.memory_space<vmem>>, vector<1x2048xf32>,
    %7 = arith.mulf %0, %5 : vector<1x2048xf32>
    %c0_5 = arith.constant 0 : index
    %c0_6 = arith.constant 0 : index
    %8 = vector.load %arg2[%c0_5, %c0_6] : memref<1x2048xf32, #tpu.memory_space<vmem>>, vector<1x2048xf32>
    tpu.vector_store %arg2[%c0_5, %c0_6], %7 {strides = array<i32>} : memref<1x2048xf32, #tpu.memory_space<vmem>>, vector<1x2048xf32>,
    return
  }
  func.func @transform_0(%arg0: i32) -> (i32, i32) {
    %c0_i32 = arith.constant 0 : i32
    %c0_i32_0 = arith.constant 0 : i32
    return %arg0, %c0_i32 : i32, i32
  }
  func.func @transform_1(%arg0: i32) -> (i32, i32) {
    %c0_i32 = arith.constant 0 : i32
    %c0_i32_0 = arith.constant 0 : i32
    return %arg0, %c0_i32 : i32, i32
  }
  func.func @transform_2(%arg0: i32) -> (i32, i32) {
    %c0_i32 = arith.constant 0 : i32
    %c0_i32_0 = arith.constant 0 : i32
    return %arg0, %c0_i32 : i32, i32
  }
}

</mosaic_0001>

<bundles_post_ra>
// kernel: tpu_custom_call.1
= control target key start
LH: loop header
LB: loop body
LE: loop exit
PB: predicated region body
PF: predicated region fallthrough
CT: control target
= control target key end

     0   :  { %8 = vsyncpa [#allocation3], 0  ;;  %s181_s0 = inlined_call_operand.hbm [shape: f32[1,2048], index: 0, kind: input, shape index: {}]   ;;  %s182_s1 = inlined_call_operand.hbm [shape: f32[1,2048], index: 1, kind: output, shape index: {0}]   ;;  %s183_s2 = inlined_call_operand.hbm [shape: f32[1,2048], index: 2, kind: output, shape index: {1}]  }
   0x1   :  { %9 = vsyncpa [#allocation4], 0 }
   0x2   :  { %10 = vsyncpa [#allocation7], 0  ;;  %s16_s11 = sshll.u32 %s181_s0, 4  ;;  %s153_s12 = smov [#allocation2]   ;;  %s17_s11 = int_to_ptr.hbm [resolvable:$true] %s16_s11 }
   0x3   :  { %s18_s13 = sshll.u32 %s153_s12, 4  ;;  %s19_s13 = int_to_ptr.vmem [resolvable:$true] %s18_s13 }
   0x4   :  { %21 = dma.hbm_to_vmem [thread:$0]  %s17_s11, 256, %s19_s13, [#allocation3]  }
   0x5   :  { %147 = dma.done.wait [#allocation3], 256  }
   0x6   :  { %148 = vsyncadd [#allocation3], 4294967040  ;;  %s154_s14 = smov [#allocation6]   ;;  %s56_s18 = sshll.u32 %s183_s2, 4  ;;  %v26_v0 = vld [vmem:[#allocation2] sm:$0xff]  ;;  %v27_v1 = vld [vmem:[#allocation2 + $0x8] sm:$0xff]  ;;  %s57_s18 = int_to_ptr.hbm [resolvable:$true] %s56_s18 }
   0x7   :  { %s54_s15 = sshll.u32 %s154_s14, 4  ;;  %vm28_vm0 = vcmp.gt.f32.partialorder %v26_v0, 0.0  ;;  %vm29_vm1 = vcmp.gt.f32.partialorder %v27_v1, 0.0  ;;  %s155_s19 = smov [#allocation5]   ;;  %v156_v2 = vmov 0.1   ;;  %s55_s15 = int_to_ptr.vmem [resolvable:$true] %s54_s15 }
   0x8   :  { %s43_s20 = sshll.u32 %s155_s19, 4  ;;  %s45_s22 = sshll.u32 %s182_s1, 4  ;;  %v30_v3 = vsel %vm28_vm0, 1.0, %v156_v2  ;;  %v31_v4 = vsel %vm29_vm1, 1.0, %v156_v2  ;;  %s44_s20 = int_to_ptr.vmem [resolvable:$true] %s43_s20  ;;  %s46_s22 = int_to_ptr.hbm [resolvable:$true] %s45_s22 }
   0x9   :  { %32 = vst [vmem:[#allocation6] sm:$0xff] %v30_v3  ;;  %v34_v5 = vmul.f32 %v30_v3, %v26_v0  ;;  %v35_v6 = vmul.f32 %v31_v4, %v27_v1 }
   0xa   :  { %33 = vst [vmem:[#allocation6 + $0x8] sm:$0xff] %v31_v4 }
   0xb   :  { %36 = vst [vmem:[#allocation5] sm:$0xff] %v34_v5  ;;  %59 = dma.vmem_to_hbm [thread:$0]  %s55_s15, 256, %s57_s18, [#allocation7]  }
   0xc   :  { %37 = vst [vmem:[#allocation5 + $0x8] sm:$0xff] %v35_v6 }
   0xd   :  { %48 = dma.vmem_to_hbm [thread:$0]  %s44_s20, 256, %s46_s22, [#allocation4]  }
   0xe   :  { %149 = dma.done.wait [#allocation4], 256  }
   0xf   :  { %150 = vsyncadd [#allocation4], 4294967040 }
  0x10   :  { %151 = dma.done.wait [#allocation7], 256  }
  0x11   :  { %152 = vsyncadd [#allocation7], 4294967040 }
  0x12   :  { %68 = vsyncpa [#allocation3], 1 }
  0x13   :  { %69 = vsyncpa [#allocation4], 1 }
  0x14   :  { %70 = vsyncpa [#allocation7], 1 }

</bundles_post_ra>
